<compile_context>
chip_gen: v7x
topology: tpu7x:2x2x1
jax: 0.10.0
libtpu: 0.0.40
codegen_flags: <defaults>
</compile_context>

<pallas_src>
import math

import jax
import jax.numpy as jnp
from jax import lax
from jax.experimental import pallas as pl
from jax.experimental.pallas import tpu as pltpu


# ----------------------------- model hyper-params -----------------------------
B = 2                              # batch
C_IMG = 3                          # image channels
IMG = 16                           # spatial size (H == W)
PATCH = 8                          # patch size -> (16/8)^2 = 4 patches
GRID_HW = IMG // PATCH
P = GRID_HW * GRID_HW              # 4 patch tokens per image
S = P + 1                          # 5 tokens incl. CLS
BS = B * S                         # 10 real rows in the fused tile
BSP = 16                           # fused rows padded to a sublane multiple
CLS0 = B * P                       # 8: first CLS row
OUT_ROWS = BSP - CLS0              # 8: rows fed through ln_post + classifier
WIDTH = 32                         # transformer width
MLP = 4 * WIDTH                    # 128
OUT_DIM = 16                       # model.visual.output_dim
NUM_CLASSES = 10
CLS_PAD = 128                      # lane-dense classifier output width
PATCH_DIM = C_IMG * PATCH * PATCH  # 192

# ----- f32 slab row layout (lane width 128) -----
_TOK0 = 0                          # rows [0, 16): token-init slab (cols 0..WIDTH)
_MASK0 = 16                        # rows [16, 32): additive attention mask bias (cols 0..BSP)
_LNPRE_G, _LNPRE_B = 32, 33
_LN1_G, _LN1_B = 34, 35
_LN2_G, _LN2_B = 36, 37
_LNPOST_G, _LNPOST_B = 38, 39
_BQKV = 40                         # packed qkv bias (cols 0..3*WIDTH)
_BO = 41
_BFC1 = 42                         # cols 0..MLP
_BFC2 = 43
_BCLS = 44                         # cols 0..CLS_PAD
_WPC0 = 48                         # rows [48, 80): fused wproj @ wcls_pad (cols 0..CLS_PAD)
FROWS = 80

# ----- bf16 weight slab row layout (lane width 128) -----
_WPE0 = 0                          # (PATCH_DIM, WIDTH)
_WQKV0 = _WPE0 + PATCH_DIM         # 192: (WIDTH, 3*WIDTH)
_WO0 = _WQKV0 + WIDTH              # 224: (WIDTH, WIDTH)
_WFC1_0 = _WO0 + WIDTH             # 256: (WIDTH, MLP)
_WFC2_0 = _WFC1_0 + WIDTH          # 288: (MLP, WIDTH)
WROWS = _WFC2_0 + MLP              # 416


# ------------------------------- kernel helpers --------------------------------
def _layernorm(x, g, b, eps=1e-5):
    mu = jnp.mean(x, axis=-1, keepdims=True)
    var = jnp.mean((x - mu) ** 2, axis=-1, keepdims=True)
    return (x - mu) * lax.rsqrt(var + eps) * g + b


def _gelu(x):
    # tanh-approximate GELU (EUP-friendly), f32
    return 0.5 * x * (1.0 + jnp.tanh(0.7978845608028654 * (x + 0.044715 * x * x * x)))


# --------------------------------- fused kernel --------------------------------
def _clip_kernel(xp_ref, w_ref, f_ref, out_ref):
    rowv = lambda r: f_ref[r:r + 1, 0:WIDTH]            # (1, WIDTH) f32 vector

    # --- patch embedding: conv2d(k=s=PATCH, bias=False) as one bf16 MXU matmul ---
    tok = jnp.dot(xp_ref[...].astype(jnp.bfloat16),
                  w_ref[_WPE0:_WPE0 + PATCH_DIM, 0:WIDTH],
                  preferred_element_type=jnp.float32)    # (BSP, WIDTH); pad rows are 0

    # --- token assembly in vregs: patch rows get tiled pos, CLS rows get cls+pos[0] ---
    x = tok + f_ref[_TOK0:_TOK0 + BSP, 0:WIDTH]
    x = _layernorm(x, rowv(_LNPRE_G), rowv(_LNPRE_B))    # ln_pre, (BSP, WIDTH) f32

    # --- transformer block: x = x + attn(ln1(x)); packed QKV, additive batch mask ---
    h = _layernorm(x, rowv(_LN1_G), rowv(_LN1_B))
    qkv = jnp.dot(h.astype(jnp.bfloat16),
                  w_ref[_WQKV0:_WQKV0 + WIDTH, 0:3 * WIDTH],
                  preferred_element_type=jnp.float32)    # (BSP, 3*WIDTH)
    qkv = qkv + f_ref[_BQKV:_BQKV + 1, 0:3 * WIDTH]
    q = qkv[:, 0:WIDTH]
    k = qkv[:, WIDTH:2 * WIDTH]
    v = qkv[:, 2 * WIDTH:3 * WIDTH]
    s = lax.dot_general(q.astype(jnp.bfloat16), k.astype(jnp.bfloat16),
                        (((1,), (1,)), ((), ())),
                        preferred_element_type=jnp.float32) * (1.0 / math.sqrt(WIDTH))
    s = s + f_ref[_MASK0:_MASK0 + BSP, 0:BSP]            # block-diag batch mask (one vadd)
    m = jnp.max(s, axis=-1, keepdims=True)
    p = jnp.exp(s - m)
    p = p * pl.reciprocal(jnp.sum(p, axis=-1, keepdims=True), approx=True)
    a = jnp.dot(p.astype(jnp.bfloat16), v.astype(jnp.bfloat16),
                preferred_element_type=jnp.float32)      # (BSP, WIDTH)
    a = jnp.dot(a.astype(jnp.bfloat16),
                w_ref[_WO0:_WO0 + WIDTH, 0:WIDTH],
                preferred_element_type=jnp.float32) + rowv(_BO)
    x = x + a

    # --- transformer block: x = x + mlp(ln2(x)) ---
    h2 = _layernorm(x, rowv(_LN2_G), rowv(_LN2_B))
    h2 = _gelu(jnp.dot(h2.astype(jnp.bfloat16),
                       w_ref[_WFC1_0:_WFC1_0 + WIDTH, 0:MLP],
                       preferred_element_type=jnp.float32)
               + f_ref[_BFC1:_BFC1 + 1, 0:MLP])
    h2 = jnp.dot(h2.astype(jnp.bfloat16),
                 w_ref[_WFC2_0:_WFC2_0 + MLP, 0:WIDTH],
                 preferred_element_type=jnp.float32) + rowv(_BFC2)
    x = x + h2

    # --- ln_post on the trailing aligned 8-row block (first B rows are the real CLS) ---
    cls = _layernorm(x[CLS0:BSP, :], rowv(_LNPOST_G), rowv(_LNPOST_B))   # (OUT_ROWS, WIDTH)

    # --- fused visual-projection + classifier (f32), lane-dense 128-wide output ---
    out_ref[...] = (jnp.dot(cls, f_ref[_WPC0:_WPC0 + WIDTH, :],
                            preferred_element_type=jnp.float32)
                    + f_ref[_BCLS:_BCLS + 1, :])


# --------------------------------- wrappers ------------------------------------
def _clip_forward_fused(xp_pad, wslab, fslab):
    vmem = pltpu.MemorySpace.VMEM
    return pl.pallas_call(
        _clip_kernel,
        out_shape=jax.ShapeDtypeStruct((OUT_ROWS, CLS_PAD), jnp.float32),
        in_specs=[pl.BlockSpec(memory_space=vmem),
                  pl.BlockSpec(memory_space=vmem),
                  pl.BlockSpec(memory_space=vmem)],
        out_specs=pl.BlockSpec(memory_space=vmem),
    )(xp_pad, wslab, fslab)


@jax.jit
def clip_finetuner_forward(x_nchw, params):
    """logits = classifier(model.encode_image(x).float())."""
    b, c, h, w = x_nchw.shape
    gh, gw = h // PATCH, w // PATCH
    # NCHW -> patch tokens (B*P, C*p*p), same unfold order as conv2d weight (c, ph, pw)
    xp = x_nchw.reshape(b, c, gh, PATCH, gw, PATCH)
    xp = xp.transpose(0, 2, 4, 1, 3, 5).reshape(b * gh * gw, c * PATCH * PATCH)
    xp_pad = jnp.zeros((BSP, PATCH_DIM), jnp.float32).at[:b * gh * gw].set(xp)
    logits_pad = _clip_forward_fused(xp_pad, params["wslab"], params["fslab"])
    return logits_pad[:b, :NUM_CLASSES]


# ----------------------------- deterministic init -------------------------------
def init_params(key):
    ks = jax.random.split(key, 12)
    n = lambda k, shape, s=0.02: (s * jax.random.normal(k, shape)).astype(jnp.float32)

    w_pe = n(ks[0], (PATCH_DIM, WIDTH))                  # conv weight, flattened & transposed
    cls_emb = n(ks[1], (WIDTH,))
    pos = n(ks[2], (S, WIDTH))
    wqkv = jnp.concatenate([n(ks[3], (WIDTH, WIDTH)),
                            n(ks[4], (WIDTH, WIDTH)),
                            n(ks[5], (WIDTH, WIDTH))], axis=1)
    wo = n(ks[6], (WIDTH, WIDTH))
    wfc1 = n(ks[7], (WIDTH, MLP))
    wfc2 = n(ks[8], (MLP, WIDTH))
    wproj = n(ks[9], (WIDTH, OUT_DIM))
    # torch.nn.Linear(OUT_DIM, NUM_CLASSES), stored transposed
    wcls = n(ks[10], (OUT_DIM, NUM_CLASSES), s=1.0 / math.sqrt(OUT_DIM))
    bcls = n(ks[11], (NUM_CLASSES,), s=1.0 / math.sqrt(OUT_DIM))

    # ---- bf16 MXU weight slab ----
    wslab = jnp.zeros((WROWS, CLS_PAD), jnp.float32)
    wslab = wslab.at[_WPE0:_WPE0 + PATCH_DIM, :WIDTH].set(w_pe)
    wslab = wslab.at[_WQKV0:_WQKV0 + WIDTH, :3 * WIDTH].set(wqkv)
    wslab = wslab.at[_WO0:_WO0 + WIDTH, :WIDTH].set(wo)
    wslab = wslab.at[_WFC1_0:_WFC1_0 + WIDTH, :MLP].set(wfc1)
    wslab = wslab.at[_WFC2_0:_WFC2_0 + MLP, :WIDTH].set(wfc2)
    wslab = wslab.astype(jnp.bfloat16)

    # ---- f32 slab: token-init, mask bias, LN params, biases, fused classifier ----
    fslab = jnp.zeros((FROWS, CLS_PAD), jnp.float32)

    # token-init: patch rows get tiled pos[1:], CLS rows get cls_emb + pos[0], pad rows 0
    tok_init = jnp.zeros((BSP, WIDTH), jnp.float32)
    tok_init = tok_init.at[:B * P].set(jnp.tile(pos[1:], (B, 1)))
    tok_init = tok_init.at[CLS0:CLS0 + B].set(cls_emb[None, :] + pos[0:1, :])
    fslab = fslab.at[_TOK0:_TOK0 + BSP, :WIDTH].set(tok_init)

    # additive attention mask bias: 0 within a batch's tokens, -1e30 elsewhere;
    # each pad row gets a unique id so it only attends to itself (finite softmax).
    patch_bid = jnp.repeat(jnp.arange(B), P)
    cls_bid = jnp.arange(B)
    pad_bid = B + jnp.arange(BSP - BS)
    bid = jnp.concatenate([patch_bid, cls_bid, pad_bid])
    mask_bias = jnp.where(bid[:, None] == bid[None, :], 0.0, -1e30).astype(jnp.float32)
    fslab = fslab.at[_MASK0:_MASK0 + BSP, :BSP].set(mask_bias)

    # LayerNorm gains (biases stay zero); attn/mlp biases stay zero
    for r in (_LNPRE_G, _LN1_G, _LN2_G, _LNPOST_G):
        fslab = fslab.at[r, :WIDTH].set(1.0)

    # classifier bias (lane-padded)
    fslab = fslab.at[_BCLS, :NUM_CLASSES].set(bcls)

    # fused (visual projection @ padded classifier weight), f32
    wcls_pad = jnp.zeros((OUT_DIM, CLS_PAD), jnp.float32).at[:, :NUM_CLASSES].set(wcls)
    wpc = wproj @ wcls_pad                                # (WIDTH, CLS_PAD)
    fslab = fslab.at[_WPC0:_WPC0 + WIDTH, :].set(wpc)

    return {"wslab": wslab, "fslab": fslab}


if __name__ == "__main__":
    key = jax.random.PRNGKey(0)
    kx, kp = jax.random.split(key)
    x = jax.random.normal(kx, (B, C_IMG, IMG, IMG), dtype=jnp.float32)   # NCHW, like PyTorch
    params = init_params(kp)

    logits = clip_finetuner_forward(x, params)
    jax.block_until_ready(logits)
    assert logits.shape == (B, NUM_CLASSES) and logits.dtype == jnp.float32
    assert bool(jnp.all(jnp.isfinite(logits)))
    print("KERNEL_OK")
</pallas_src>

<mosaic_0001>
module attributes {stable_mosaic.version = 11 : i64} {
  func.func @_clip_kernel(%arg0: memref<16x192xf32, #tpu.memory_space<vmem>>, %arg1: memref<416x128xbf16, #tpu.memory_space<vmem>>, %arg2: memref<80x128xf32, #tpu.memory_space<vmem>>, %arg3: memref<8x128xf32, #tpu.memory_space<vmem>>) attributes {dimension_semantics = [], scalar_prefetch = 0 : i64, scratch_operands = 0 : i64, tpu.core_type = #tpu.core_type<tc>} {
    %c0 = arith.constant 0 : index
    %c0_0 = arith.constant 0 : index
    %0 = vector.load %arg0[%c0, %c0_0] : memref<16x192xf32, #tpu.memory_space<vmem>>, vector<16x192xf32>
    %1 = arith.truncf %0 : vector<16x192xf32> to vector<16x192xbf16>
    %c0_1 = arith.constant 0 : index
    %c0_2 = arith.constant 0 : index
    %2 = vector.load %arg1[%c0_1, %c0_2] : memref<416x128xbf16, #tpu.memory_space<vmem>>, vector<192x32xbf16>
    %cst = arith.constant dense<0.000000e+00> : vector<16x32xf32>
    %3 = tpu.matmul %1, %2, %cst {dimension_numbers = #tpu.dot_dimension_numbers<[1], [0], [0], [1], [0, 0, 1, 1], [], []>} : vector<16x192xbf16>, vector<192x32xbf16>, vector<16x32xf32> -> vector<16x32xf32>
    %c0_3 = arith.constant 0 : index
    %c0_4 = arith.constant 0 : index
    %4 = vector.load %arg2[%c0_3, %c0_4] : memref<80x128xf32, #tpu.memory_space<vmem>>, vector<16x32xf32>
    %5 = arith.addf %3, %4 : vector<16x32xf32>
    %c32 = arith.constant 32 : index
    %c0_5 = arith.constant 0 : index
    %6 = vector.load %arg2[%c32, %c0_5] : memref<80x128xf32, #tpu.memory_space<vmem>>, vector<1x32xf32>
    %c33 = arith.constant 33 : index
    %c0_6 = arith.constant 0 : index
    %7 = vector.load %arg2[%c33, %c0_6] : memref<80x128xf32, #tpu.memory_space<vmem>>, vector<1x32xf32>
    %cst_7 = arith.constant dense<0.000000e+00> : vector<16xf32>
    %8 = vector.multi_reduction <add>, %5, %cst_7 [1] : vector<16x32xf32> to vector<16xf32>
    %9 = vector.shape_cast %8 : vector<16xf32> to vector<16x1xf32>
    %cst_8 = arith.constant 3.200000e+01 : f32
    %10 = vector.broadcast %cst_8 : f32 to vector<16x1xf32>
    %11 = arith.divf %9, %10 : vector<16x1xf32>
    %12 = vector.broadcast %11 : vector<16x1xf32> to vector<16x32xf32>
    %13 = arith.subf %5, %12 : vector<16x32xf32>
    %14 = arith.mulf %13, %13 : vector<16x32xf32>
    %cst_9 = arith.constant dense<0.000000e+00> : vector<16xf32>
    %15 = vector.multi_reduction <add>, %14, %cst_9 [1] : vector<16x32xf32> to vector<16xf32>
    %16 = vector.shape_cast %15 : vector<16xf32> to vector<16x1xf32>
    %cst_10 = arith.constant 3.200000e+01 : f32
    %17 = vector.broadcast %cst_10 : f32 to vector<16x1xf32>
    %18 = arith.divf %16, %17 : vector<16x1xf32>
    %19 = vector.broadcast %11 : vector<16x1xf32> to vector<16x32xf32>
    %20 = arith.subf %5, %19 : vector<16x32xf32>
    %cst_11 = arith.constant 9.99999974E-6 : f32
    %21 = vector.broadcast %cst_11 : f32 to vector<16x1xf32>
    %22 = arith.addf %18, %21 : vector<16x1xf32>
    %23 = math.rsqrt %22 : vector<16x1xf32>
    %24 = vector.broadcast %23 : vector<16x1xf32> to vector<16x32xf32>
    %25 = arith.mulf %20, %24 : vector<16x32xf32>
    %26 = vector.broadcast %6 : vector<1x32xf32> to vector<16x32xf32>
    %27 = arith.mulf %25, %26 : vector<16x32xf32>
    %28 = vector.broadcast %7 : vector<1x32xf32> to vector<16x32xf32>
    %29 = arith.addf %27, %28 : vector<16x32xf32>
    %c34 = arith.constant 34 : index
    %c0_12 = arith.constant 0 : index
    %30 = vector.load %arg2[%c34, %c0_12] : memref<80x128xf32, #tpu.memory_space<vmem>>, vector<1x32xf32>
    %c35 = arith.constant 35 : index
    %c0_13 = arith.constant 0 : index
    %31 = vector.load %arg2[%c35, %c0_13] : memref<80x128xf32, #tpu.memory_space<vmem>>, vector<1x32xf32>
    %cst_14 = arith.constant dense<0.000000e+00> : vector<16xf32>
    %32 = vector.multi_reduction <add>, %29, %cst_14 [1] : vector<16x32xf32> to vector<16xf32>
    %33 = vector.shape_cast %32 : vector<16xf32> to vector<16x1xf32>
    %cst_15 = arith.constant 3.200000e+01 : f32
    %34 = vector.broadcast %cst_15 : f32 to vector<16x1xf32>
    %35 = arith.divf %33, %34 : vector<16x1xf32>
    %36 = vector.broadcast %35 : vector<16x1xf32> to vector<16x32xf32>
    %37 = arith.subf %29, %36 : vector<16x32xf32>
    %38 = arith.mulf %37, %37 : vector<16x32xf32>
    %cst_16 = arith.constant dense<0.000000e+00> : vector<16xf32>
    %39 = vector.multi_reduction <add>, %38, %cst_16 [1] : vector<16x32xf32> to vector<16xf32>
    %40 = vector.shape_cast %39 : vector<16xf32> to vector<16x1xf32>
    %cst_17 = arith.constant 3.200000e+01 : f32
    %41 = vector.broadcast %cst_17 : f32 to vector<16x1xf32>
    %42 = arith.divf %40, %41 : vector<16x1xf32>
    %43 = vector.broadcast %35 : vector<16x1xf32> to vector<16x32xf32>
    %44 = arith.subf %29, %43 : vector<16x32xf32>
    %cst_18 = arith.constant 9.99999974E-6 : f32
    %45 = vector.broadcast %cst_18 : f32 to vector<16x1xf32>
    %46 = arith.addf %42, %45 : vector<16x1xf32>
    %47 = math.rsqrt %46 : vector<16x1xf32>
    %48 = vector.broadcast %47 : vector<16x1xf32> to vector<16x32xf32>
    %49 = arith.mulf %44, %48 : vector<16x32xf32>
    %50 = vector.broadcast %30 : vector<1x32xf32> to vector<16x32xf32>
    %51 = arith.mulf %49, %50 : vector<16x32xf32>
    %52 = vector.broadcast %31 : vector<1x32xf32> to vector<16x32xf32>
    %53 = arith.addf %51, %52 : vector<16x32xf32>
    %54 = arith.truncf %53 : vector<16x32xf32> to vector<16x32xbf16>
    %c192 = arith.constant 192 : index
    %c0_19 = arith.constant 0 : index
    %55 = vector.load %arg1[%c192, %c0_19] : memref<416x128xbf16, #tpu.memory_space<vmem>>, vector<32x96xbf16>
    %cst_20 = arith.constant dense<0.000000e+00> : vector<16x96xf32>
    %56 = tpu.matmul %54, %55, %cst_20 {dimension_numbers = #tpu.dot_dimension_numbers<[1], [0], [0], [1], [0, 0, 1, 1], [], []>} : vector<16x32xbf16>, vector<32x96xbf16>, vector<16x96xf32> -> vector<16x96xf32>
    %c40 = arith.constant 40 : index
    %c0_21 = arith.constant 0 : index
    %57 = vector.load %arg2[%c40, %c0_21] : memref<80x128xf32, #tpu.memory_space<vmem>>, vector<1x96xf32>
    %58 = vector.broadcast %57 : vector<1x96xf32> to vector<16x96xf32>
    %59 = arith.addf %56, %58 : vector<16x96xf32>
    %60 = vector.extract_strided_slice %59 {offsets = [0, 0], sizes = [16, 32], strides = [1, 1]} : vector<16x96xf32> to vector<16x32xf32>
    %61 = vector.extract_strided_slice %59 {offsets = [0, 32], sizes = [16, 32], strides = [1, 1]} : vector<16x96xf32> to vector<16x32xf32>
    %62 = vector.extract_strided_slice %59 {offsets = [0, 64], sizes = [16, 32], strides = [1, 1]} : vector<16x96xf32> to vector<16x32xf32>
    %63 = arith.truncf %60 : vector<16x32xf32> to vector<16x32xbf16>
    %64 = arith.truncf %61 : vector<16x32xf32> to vector<16x32xbf16>
    %cst_22 = arith.constant dense<0.000000e+00> : vector<16x16xf32>
    %65 = tpu.matmul %63, %64, %cst_22 {dimension_numbers = #tpu.dot_dimension_numbers<[1], [1], [0], [0], [0, 0, 1, 0], [], []>} : vector<16x32xbf16>, vector<16x32xbf16>, vector<16x16xf32> -> vector<16x16xf32>
    %cst_23 = arith.constant 0.176776692 : f32
    %66 = vector.broadcast %cst_23 : f32 to vector<16x16xf32>
    %67 = arith.mulf %65, %66 : vector<16x16xf32>
    %c16 = arith.constant 16 : index
    %c0_24 = arith.constant 0 : index
    %68 = vector.load %arg2[%c16, %c0_24] : memref<80x128xf32, #tpu.memory_space<vmem>>, vector<16x16xf32>
    %69 = arith.addf %67, %68 : vector<16x16xf32>
    %cst_25 = arith.constant dense<0xFF800000> : vector<16xf32>
    %70 = vector.multi_reduction <maximumf>, %69, %cst_25 [1] : vector<16x16xf32> to vector<16xf32>
    %71 = vector.shape_cast %70 : vector<16xf32> to vector<16x1xf32>
    %72 = vector.broadcast %71 : vector<16x1xf32> to vector<16x16xf32>
    %73 = arith.subf %69, %72 : vector<16x16xf32>
    %74 = math.exp %73 : vector<16x16xf32>
    %cst_26 = arith.constant dense<0.000000e+00> : vector<16xf32>
    %75 = vector.multi_reduction <add>, %74, %cst_26 [1] : vector<16x16xf32> to vector<16xf32>
    %76 = vector.shape_cast %75 : vector<16xf32> to vector<16x1xf32>
    %77 = tpu.reciprocal %76 {approx = true} : vector<16x1xf32> -> vector<16x1xf32>
    %78 = vector.broadcast %77 : vector<16x1xf32> to vector<16x16xf32>
    %79 = arith.mulf %74, %78 : vector<16x16xf32>
    %80 = arith.truncf %79 : vector<16x16xf32> to vector<16x16xbf16>
    %81 = arith.truncf %62 : vector<16x32xf32> to vector<16x32xbf16>
    %cst_27 = arith.constant dense<0.000000e+00> : vector<16x32xf32>
    %82 = tpu.matmul %80, %81, %cst_27 {dimension_numbers = #tpu.dot_dimension_numbers<[1], [0], [0], [1], [0, 0, 1, 1], [], []>} : vector<16x16xbf16>, vector<16x32xbf16>, vector<16x32xf32> -> vector<16x32xf32>
    %83 = arith.truncf %82 : vector<16x32xf32> to vector<16x32xbf16>
    %c224 = arith.constant 224 : index
    %c0_28 = arith.constant 0 : index
    %84 = vector.load %arg1[%c224, %c0_28] : memref<416x128xbf16, #tpu.memory_space<vmem>>, vector<32x32xbf16>
    %cst_29 = arith.constant dense<0.000000e+00> : vector<16x32xf32>
    %85 = tpu.matmul %83, %84, %cst_29 {dimension_numbers = #tpu.dot_dimension_numbers<[1], [0], [0], [1], [0, 0, 1, 1], [], []>} : vector<16x32xbf16>, vector<32x32xbf16>, vector<16x32xf32> -> vector<16x32xf32>
    %c41 = arith.constant 41 : index
    %c0_30 = arith.constant 0 : index
    %86 = vector.load %arg2[%c41, %c0_30] : memref<80x128xf32, #tpu.memory_space<vmem>>, vector<1x32xf32>
    %87 = vector.broadcast %86 : vector<1x32xf32> to vector<16x32xf32>
    %88 = arith.addf %85, %87 : vector<16x32xf32>
    %89 = arith.addf %29, %88 : vector<16x32xf32>
    %c36 = arith.constant 36 : index
    %c0_31 = arith.constant 0 : index
    %90 = vector.load %arg2[%c36, %c0_31] : memref<80x128xf32, #tpu.memory_space<vmem>>, vector<1x32xf32>
    %c37 = arith.constant 37 : index
    %c0_32 = arith.constant 0 : index
    %91 = vector.load %arg2[%c37, %c0_32] : memref<80x128xf32, #tpu.memory_space<vmem>>, vector<1x32xf32>
    %cst_33 = arith.constant dense<0.000000e+00> : vector<16xf32>
    %92 = vector.multi_reduction <add>, %89, %cst_33 [1] : vector<16x32xf32> to vector<16xf32>
    %93 = vector.shape_cast %92 : vector<16xf32> to vector<16x1xf32>
    %cst_34 = arith.constant 3.200000e+01 : f32
    %94 = vector.broadcast %cst_34 : f32 to vector<16x1xf32>
    %95 = arith.divf %93, %94 : vector<16x1xf32>
    %96 = vector.broadcast %95 : vector<16x1xf32> to vector<16x32xf32>
    %97 = arith.subf %89, %96 : vector<16x32xf32>
    %98 = arith.mulf %97, %97 : vector<16x32xf32>
    %cst_35 = arith.constant dense<0.000000e+00> : vector<16xf32>
    %99 = vector.multi_reduction <add>, %98, %cst_35 [1] : vector<16x32xf32> to vector<16xf32>
    %100 = vector.shape_cast %99 : vector<16xf32> to vector<16x1xf32>
    %cst_36 = arith.constant 3.200000e+01 : f32
    %101 = vector.broadcast %cst_36 : f32 to vector<16x1xf32>
    %102 = arith.divf %100, %101 : vector<16x1xf32>
    %103 = vector.broadcast %95 : vector<16x1xf32> to vector<16x32xf32>
    %104 = arith.subf %89, %103 : vector<16x32xf32>
    %cst_37 = arith.constant 9.99999974E-6 : f32
    %105 = vector.broadcast %cst_37 : f32 to vector<16x1xf32>
    %106 = arith.addf %102, %105 : vector<16x1xf32>
    %107 = math.rsqrt %106 : vector<16x1xf32>
    %108 = vector.broadcast %107 : vector<16x1xf32> to vector<16x32xf32>
    %109 = arith.mulf %104, %108 : vector<16x32xf32>
    %110 = vector.broadcast %90 : vector<1x32xf32> to vector<16x32xf32>
    %111 = arith.mulf %109, %110 : vector<16x32xf32>
    %112 = vector.broadcast %91 : vector<1x32xf32> to vector<16x32xf32>
    %113 = arith.addf %111, %112 : vector<16x32xf32>
    %114 = arith.truncf %113 : vector<16x32xf32> to vector<16x32xbf16>
    %c256 = arith.constant 256 : index
    %c0_38 = arith.constant 0 : index
    %115 = vector.load %arg1[%c256, %c0_38] : memref<416x128xbf16, #tpu.memory_space<vmem>>, vector<32x128xbf16>
    %cst_39 = arith.constant dense<0.000000e+00> : vector<16x128xf32>
    %116 = tpu.matmul %114, %115, %cst_39 {dimension_numbers = #tpu.dot_dimension_numbers<[1], [0], [0], [1], [0, 0, 1, 1], [], []>} : vector<16x32xbf16>, vector<32x128xbf16>, vector<16x128xf32> -> vector<16x128xf32>
    %c42 = arith.constant 42 : index
    %c0_40 = arith.constant 0 : index
    %117 = vector.load %arg2[%c42, %c0_40] : memref<80x128xf32, #tpu.memory_space<vmem>>, vector<1x128xf32>
    %118 = vector.broadcast %117 : vector<1x128xf32> to vector<16x128xf32>
    %119 = arith.addf %116, %118 : vector<16x128xf32>
    %cst_41 = arith.constant 5.000000e-01 : f32
    %120 = vector.broadcast %cst_41 : f32 to vector<16x128xf32>
    %121 = arith.mulf %120, %119 : vector<16x128xf32>
    %cst_42 = arith.constant 4.471500e-02 : f32
    %122 = vector.broadcast %cst_42 : f32 to vector<16x128xf32>
    %123 = arith.mulf %122, %119 : vector<16x128xf32>
    %124 = arith.mulf %123, %119 : vector<16x128xf32>
    %125 = arith.mulf %124, %119 : vector<16x128xf32>
    %126 = arith.addf %119, %125 : vector<16x128xf32>
    %cst_43 = arith.constant 0.797884583 : f32
    %127 = vector.broadcast %cst_43 : f32 to vector<16x128xf32>
    %128 = arith.mulf %127, %126 : vector<16x128xf32>
    %129 = math.tanh %128 : vector<16x128xf32>
    %cst_44 = arith.constant 1.000000e+00 : f32
    %130 = vector.broadcast %cst_44 : f32 to vector<16x128xf32>
    %131 = arith.addf %130, %129 : vector<16x128xf32>
    %132 = arith.mulf %121, %131 : vector<16x128xf32>
    %133 = arith.truncf %132 : vector<16x128xf32> to vector<16x128xbf16>
    %c288 = arith.constant 288 : index
    %c0_45 = arith.constant 0 : index
    %134 = vector.load %arg1[%c288, %c0_45] : memref<416x128xbf16, #tpu.memory_space<vmem>>, vector<128x32xbf16>
    %cst_46 = arith.constant dense<0.000000e+00> : vector<16x32xf32>
    %135 = tpu.matmul %133, %134, %cst_46 {dimension_numbers = #tpu.dot_dimension_numbers<[1], [0], [0], [1], [0, 0, 1, 1], [], []>} : vector<16x128xbf16>, vector<128x32xbf16>, vector<16x32xf32> -> vector<16x32xf32>
    %c43 = arith.constant 43 : index
    %c0_47 = arith.constant 0 : index
    %136 = vector.load %arg2[%c43, %c0_47] : memref<80x128xf32, #tpu.memory_space<vmem>>, vector<1x32xf32>
    %137 = vector.broadcast %136 : vector<1x32xf32> to vector<16x32xf32>
    %138 = arith.addf %135, %137 : vector<16x32xf32>
    %139 = arith.addf %89, %138 : vector<16x32xf32>
    %140 = vector.extract_strided_slice %139 {offsets = [8, 0], sizes = [8, 32], strides = [1, 1]} : vector<16x32xf32> to vector<8x32xf32>
    %c38 = arith.constant 38 : index
    %c0_48 = arith.constant 0 : index
    %141 = vector.load %arg2[%c38, %c0_48] : memref<80x128xf32, #tpu.memory_space<vmem>>, vector<1x32xf32>
    %c39 = arith.constant 39 : index
    %c0_49 = arith.constant 0 : index
    %142 = vector.load %arg2[%c39, %c0_49] : memref<80x128xf32, #tpu.memory_space<vmem>>, vector<1x32xf32>
    %cst_50 = arith.constant dense<0.000000e+00> : vector<8xf32>
    %143 = vector.multi_reduction <add>, %140, %cst_50 [1] : vector<8x32xf32> to vector<8xf32>
    %144 = vector.shape_cast %143 : vector<8xf32> to vector<8x1xf32>
    %cst_51 = arith.constant 3.200000e+01 : f32
    %145 = vector.broadcast %cst_51 : f32 to vector<8x1xf32>
    %146 = arith.divf %144, %145 : vector<8x1xf32>
    %147 = vector.broadcast %146 : vector<8x1xf32> to vector<8x32xf32>
    %148 = arith.subf %140, %147 : vector<8x32xf32>
    %149 = arith.mulf %148, %148 : vector<8x32xf32>
    %cst_52 = arith.constant dense<0.000000e+00> : vector<8xf32>
    %150 = vector.multi_reduction <add>, %149, %cst_52 [1] : vector<8x32xf32> to vector<8xf32>
    %151 = vector.shape_cast %150 : vector<8xf32> to vector<8x1xf32>
    %cst_53 = arith.constant 3.200000e+01 : f32
    %152 = vector.broadcast %cst_53 : f32 to vector<8x1xf32>
    %153 = arith.divf %151, %152 : vector<8x1xf32>
    %154 = vector.broadcast %146 : vector<8x1xf32> to vector<8x32xf32>
    %155 = arith.subf %140, %154 : vector<8x32xf32>
    %cst_54 = arith.constant 9.99999974E-6 : f32
    %156 = vector.broadcast %cst_54 : f32 to vector<8x1xf32>
    %157 = arith.addf %153, %156 : vector<8x1xf32>
    %158 = math.rsqrt %157 : vector<8x1xf32>
    %159 = vector.broadcast %158 : vector<8x1xf32> to vector<8x32xf32>
    %160 = arith.mulf %155, %159 : vector<8x32xf32>
    %161 = vector.broadcast %141 : vector<1x32xf32> to vector<8x32xf32>
    %162 = arith.mulf %160, %161 : vector<8x32xf32>
    %163 = vector.broadcast %142 : vector<1x32xf32> to vector<8x32xf32>
    %164 = arith.addf %162, %163 : vector<8x32xf32>
    %c48 = arith.constant 48 : index
    %c0_55 = arith.constant 0 : index
    %165 = vector.load %arg2[%c48, %c0_55] : memref<80x128xf32, #tpu.memory_space<vmem>>, vector<32x128xf32>
    %cst_56 = arith.constant dense<0.000000e+00> : vector<8x128xf32>
    %166 = tpu.matmul %164, %165, %cst_56 {dimension_numbers = #tpu.dot_dimension_numbers<[1], [0], [0], [1], [0, 0, 1, 1], [], []>} : vector<8x32xf32>, vector<32x128xf32>, vector<8x128xf32> -> vector<8x128xf32>
    %c44 = arith.constant 44 : index
    %c0_57 = arith.constant 0 : index
    %167 = vector.load %arg2[%c44, %c0_57] : memref<80x128xf32, #tpu.memory_space<vmem>>, vector<1x128xf32>
    %168 = vector.broadcast %167 : vector<1x128xf32> to vector<8x128xf32>
    %169 = arith.addf %166, %168 : vector<8x128xf32>
    %c0_58 = arith.constant 0 : index
    %c0_59 = arith.constant 0 : index
    %170 = vector.load %arg3[%c0_58, %c0_59] : memref<8x128xf32, #tpu.memory_space<vmem>>, vector<8x128xf32>
    tpu.vector_store %arg3[%c0_58, %c0_59], %169 {strides = array<i32>} : memref<8x128xf32, #tpu.memory_space<vmem>>, vector<8x128xf32>,
    return
  }
}

</mosaic_0001>

<bundles_post_ra>
// kernel: clip_finetuner_forward.1
= control target key start
LH: loop header
LB: loop body
LE: loop exit
PB: predicated region body
PF: predicated region fallthrough
CT: control target
= control target key end

     0   :  { %v1059_v0 = vmov 0   ;;  %vm119_vm0 = vcmask 523264   ;;  %vm166_vm1 = vcmask 261120   ;;  %vm1061_vm2 = vmmov 0   ;;  %s1062_s7 = smov 96   ;;  %s1063_s12 = smov 64   ;;  %s1311_s1 = inlined_call_operand.vmem [shape: bf16[416,128], index: 1, kind: input, shape index: {}]   ;;  %s1312_s0 = inlined_call_operand.vmem [shape: f32[16,192], index: 0, kind: input, shape index: {}]   ;;  %s1313_s2 = inlined_call_operand.vmem [shape: f32[80,128], index: 2, kind: input, shape index: {}]   ;;  %s1314_s3 = inlined_call_operand.vmem [shape: f32[8,128], index: 3, kind: output, shape index: {}]  }
   0x1   :  { %123 = vmatprep.subr.bf16.mxu0 %v1059_v0  ;;  %v1007_v1 = vld [vmem:[%s1311_s1] sm:$0xff]   ;;  %v1008_v2 = vld [vmem:[%s1311_s1 + $0x8] sm:$0xff]   ;;  %v1009_v3 = vld [vmem:[%s1311_s1 + $0x10] sm:$0xff]   ;;  %vm369_vm3 = vcmask 130048  }
   0x2   :  { %124 = vmatpush1.bf16.msra.mxu0 %v1007_v1  ;;  %v1010_v4 = vld [vmem:[%s1311_s1 + $0x18] sm:$0xff]   ;;  %v16_v5 = vld [vmem:[%s1312_s0 + $0x8] sm:$0xff]  ;;  %v1011_v7 = vld [vmem:[%s1311_s1 + $0x20] sm:$0xff]  }
   0x3   :  { %125 = vmatprep.subr.bf16.mxu0 %v1059_v0  ;;  %v18_v6 = vld [vmem:[%s1312_s0 + $0x18] sm:$0xff]  ;;  %v1012_v9 = vld [vmem:[%s1311_s1 + $0x28] sm:$0xff]   ;;  %v1013_v10 = vld [vmem:[%s1311_s1 + $0x30] sm:$0xff]  }
   0x4   :  { %v20_v8 = vpack.c.bf16 %v18_v6, %v16_v5  ;;  %v1014_v11 = vld [vmem:[%s1311_s1 + $0x38] sm:$0xff]   ;;  %v1015_v12 = vld [vmem:[%s1311_s1 + $0x40] sm:$0xff]   ;;  %v1016_v13 = vld [vmem:[%s1311_s1 + $0x48] sm:$0xff]  }
   0x5   :  { %v1017_v14 = vld [vmem:[%s1311_s1 + $0x50] sm:$0xff]   ;;  %v1018_v15 = vld [vmem:[%s1311_s1 + $0x58] sm:$0xff]   ;;  %v15_v16 = vld [vmem:[%s1312_s0] sm:$0xff] }
   0x6   :  { %126 = vmatpush1.bf16.msra.mxu0 %v1008_v2  ;;  %867 = vmatprep.mubr.msk.bf16.mxu0 %vm119_vm0, %v20_v8  ;;  %v17_v17 = vld [vmem:[%s1312_s0 + $0x10] sm:$0xff]  ;;  %v45_v19 = vld [vmem:[%s1313_s2] sm:$0xff]  ;;  %v46_v21 = vld [vmem:[%s1313_s2 + $0x8] sm:$0xff] }
   0x7   :  { %127 = vmatprep.subr.bf16.mxu0 %v1059_v0  ;;  %v19_v18 = vpack.c.bf16 %v17_v17, %v15_v16  ;;  %v868_v46 = vld [vmem:[%s1313_s2 + $0x20] ss:$0 sm:$0xff]  ;;  %v869_v48 = vld [vmem:[%s1313_s2 + $0x21] ss:$0 sm:$0xff]  ;;  %v1020_v5 = vld [vmem:[%s1311_s1 + $0x68] sm:$0xff]  }
   0xa   :  { %128 = vmatpush1.bf16.msra.mxu0 %v1009_v3  ;;  %v1019_v3 = vld [vmem:[%s1311_s1 + $0x60] sm:$0xff]  }
   0xb   :  { %129 = vmatprep.subr.bf16.mxu0 %v1059_v0 }
   0xe   :  { %130 = vmatpush1.bf16.msra.mxu0 %v1010_v4  ;;  %v1060_v4 = vmov 0.0  }
   0xf   :  { %131 = vmatprep.subr.bf16.mxu0 %v1059_v0  ;;  %936 = vmatprep.subr.bf16.mxu1 %v1060_v4 }
  0x10   :  { %938 = vmatprep.mubr.msk.bf16.mxu1 %vm1061_vm2, %v1060_v4 }
  0x12   :  { %132 = vmatpush1.bf16.msra.mxu0 %v1011_v7 }
  0x13   :  { %133 = vmatprep.subr.bf16.mxu0 %v1059_v0 }
  0x16   :  { %134 = vmatpush1.bf16.msra.mxu0 %v1012_v9 }
  0x17   :  { %135 = vmatprep.subr.bf16.mxu0 %v1059_v0 }
  0x1a   :  { %136 = vmatpush1.bf16.msra.mxu0 %v1013_v10 }
  0x1b   :  { %137 = vmatprep.subr.bf16.mxu0 %v1059_v0 }
  0x1e   :  { %138 = vmatpush1.bf16.msra.mxu0 %v1014_v11 }
  0x1f   :  { %139 = vmatprep.subr.bf16.mxu0 %v1059_v0 }
  0x22   :  { %140 = vmatpush1.bf16.msra.mxu0 %v1015_v12 }
  0x23   :  { %141 = vmatprep.subr.bf16.mxu0 %v1059_v0 }
  0x26   :  { %142 = vmatpush1.bf16.msra.mxu0 %v1016_v13 }
  0x27   :  { %143 = vmatprep.subr.bf16.mxu0 %v1059_v0 }
  0x2a   :  { %144 = vmatpush1.bf16.msra.mxu0 %v1017_v14  ;;  %v870_v14 = vld [vmem:[%s1313_s2 + $0x22] ss:$0 sm:$0xff] }
  0x2b   :  { %145 = vmatprep.subr.bf16.mxu0 %v1059_v0 }
  0x2e   :  { %146 = vmatpush1.bf16.msra.mxu0 %v1018_v15 }
  0x2f   :  { %928 = vmatprep.subr.bf16.mxu0 %v1060_v4 }
  0x31   :  { %156 = vmatmul.mubr.bf16.vlgmr.msra.gmra.mrb[0].mxu0 %v19_v18  ;;  %v871_v18 = vld [vmem:[%s1313_s2 + $0x23] ss:$0 sm:$0xff] }
  0x32   :  { %929 = vmatpush3.bf16.msra.mxu0 %v1019_v3  ;;  %932 = vmatprep.mubr.msk.bf16.mxu0 %vm1061_vm2, %v1060_v4 }
  0x33   :  { %930 = vmatprep.subr.bf16.mxu0 %v1060_v4 }
  0x36   :  { %931 = vmatpush3.bf16.msra.mxu0 %v1020_v5 }
 0x104   :  { %v157_v20 = vpop.f32.mrb[0].mxu0 }
 0x105   :  { %v158_v22 = vadd.f32 %v157_v20, %v45_v19  ;;  %v159_v23 = vpop.f32.mrb[1].mxu0 }
 0x106   :  { %v160_v24 = vpop.f32.mrb[2].mxu0  ;;  %v872_v23 = vld [vmem:[%s1313_s2 + $0x28] ss:$0 sm:$0xff] }
 0x107   :  { %v161_v25 = vadd.f32 %v160_v24, %v46_v21  ;;  %v162_v26 = vpop.f32.mrb[3].mxu0  ;;  %v167_v27 = vsel %vm166_vm1, %v158_v22, 0.0 }
 0x108   :  { %168 = vadd.xlane.f32.xlu0 %v167_v27 }
 0x109   :  { %v170_v28 = vsel %vm166_vm1, %v161_v25, 0.0 }
 0x10c   :  { %171 = vadd.xlane.f32.xlu0 %v170_v28 }
 0x195   :  { %v169_v29 = vpop.xlane.xlu0 %168 }
 0x196   :  { %v174_v30 = vmul.f32 0.03125, %v169_v29 }
 0x198   :  { %v176_v31 = vsub.f32 %v158_v22, %v174_v30 }
 0x199   :  { %v172_v32 = vpop.xlane.xlu0 %171 }
 0x19a   :  { %v175_v33 = vmul.f32 0.03125, %v172_v32  ;;  %v178_v34 = vmul.f32 %v176_v31, %v176_v31 }
 0x19c   :  { %v177_v35 = vsub.f32 %v161_v25, %v175_v33  ;;  %v180_v36 = vsel %vm166_vm1, %v178_v34, 0.0  ;;  %v365_v34 = vld [vmem:[%s1313_s2 + $0x10] sm:$0xff] }
 0x19d   :  { %181 = vadd.xlane.f32.xlu1 %v180_v36 }
 0x19e   :  { %v179_v37 = vmul.f32 %v177_v35, %v177_v35 }
 0x1a0   :  { %v183_v38 = vsel %vm166_vm1, %v179_v37, 0.0 }
 0x1a1   :  { %184 = vadd.xlane.f32.xlu1 %v183_v38  ;;  %v366_v38 = vld [vmem:[%s1313_s2 + $0x18] sm:$0xff] }
 0x22a   :  { %v182_v39 = vpop.xlane.xlu1 %181 }
 0x22b   :  { %v186_v40 = vmul.f32 0.03125, %v182_v39 }
 0x22d   :  { %v188_v41 = vadd.f32 1e-05, %v186_v40 }
 0x22e   :  { %v185_v42 = vpop.xlane.xlu1 %184 }
 0x22f   :  { %1033 = vrsqrt.f32 %v188_v41  ;;  %v187_v43 = vmul.f32 0.03125, %v185_v42 }
 0x231   :  { %v189_v44 = vadd.f32 1e-05, %v187_v43 }
 0x233   :  { %1035 = vrsqrt.f32 %v189_v44 }
 0x239   :  { %v1034_v45 = vpop.eup %1033 }
 0x23a   :  { %v192_v47 = vmul.f32 %v1034_v45, %v176_v31 }
 0x23c   :  { %v198_v49 = vmul.f32 %v868_v46, %v192_v47 }
 0x23d   :  { %v1036_v50 = vpop.eup %1035 }
 0x23e   :  { %v1149_v51 = vadd.f32 %v869_v48, %v198_v49  ;;  %v193_v52 = vmul.f32 %v1036_v50, %v177_v35 }
 0x240   :  { %v208_v53 = vsel %vm166_vm1, %v1149_v51, 0.0  ;;  %v199_v54 = vmul.f32 %v868_v46, %v193_v52 }
 0x241   :  { %209 = vadd.xlane.f32.xlu0 %v208_v53 }
 0x242   :  { %v1153_v55 = vadd.f32 %v869_v48, %v199_v54 }
 0x244   :  { %v211_v56 = vsel %vm166_vm1, %v1153_v55, 0.0 }
 0x245   :  { %212 = vadd.xlane.f32.xlu1 %v211_v56 }
 0x2ce   :  { %v210_v57 = vpop.xlane.xlu0 %209 }
 0x2cf   :  { %v214_v58 = vmul.f32 0.03125, %v210_v57 }
 0x2d1   :  { %v216_v59 = vsub.f32 %v1149_v51, %v214_v58 }
 0x2d2   :  { %v213_v60 = vpop.xlane.xlu1 %212 }
 0x2d3   :  { %v215_v61 = vmul.f32 0.03125, %v213_v60  ;;  %v218_v62 = vmul.f32 %v216_v59, %v216_v59 }
 0x2d5   :  { %v217_v63 = vsub.f32 %v1153_v55, %v215_v61  ;;  %v220_v0 = vsel %vm166_vm1, %v218_v62, 0.0 }
 0x2d6   :  { %221 = vadd.xlane.f32.xlu0 %v220_v0  ;;  %v1021_v0 = vld [vmem:[%s1311_s1 + $0x70] sm:$0xff]  }
 0x2d7   :  { %v219_v1 = vmul.f32 %v217_v63, %v217_v63 }
 0x2d9   :  { %v223_v2 = vsel %vm166_vm1, %v219_v1, 0.0 }
 0x2da   :  { %224 = vadd.xlane.f32.xlu1 %v223_v2  ;;  %v1022_v2 = vld [vmem:[%s1311_s1 + $0x78] sm:$0xff]  }
 0x363   :  { %v222_v6 = vpop.xlane.xlu0 %221 }
 0x364   :  { %v226_v7 = vmul.f32 0.03125, %v222_v6 }
 0x366   :  { %v228_v8 = vadd.f32 1e-05, %v226_v7 }
 0x367   :  { %v225_v9 = vpop.xlane.xlu1 %224 }
 0x368   :  { %1037 = vrsqrt.f32 %v228_v8  ;;  %v227_v10 = vmul.f32 0.03125, %v225_v9  ;;  %v878_v9 = vld [vmem:[%s1313_s2 + $0x29] ss:$0 sm:$0xff] }
 0x36a   :  { %v229_v11 = vadd.f32 1e-05, %v227_v10 }
 0x36c   :  { %1039 = vrsqrt.f32 %v229_v11 }
 0x372   :  { %v1038_v12 = vpop.eup %1037 }
 0x373   :  { %v232_v13 = vmul.f32 %v1038_v12, %v216_v59 }
 0x375   :  { %v238_v16 = vmul.f32 %v870_v14, %v232_v13 }
 0x376   :  { %v1040_v15 = vpop.eup %1039 }
 0x377   :  { %v233_v17 = vmul.f32 %v1040_v15, %v217_v63  ;;  %v244_v20 = vadd.f32 %v871_v18, %v238_v16 }
 0x379   :  { %v239_v19 = vmul.f32 %v870_v14, %v233_v17 }
 0x37b   :  { %v245_v21 = vadd.f32 %v871_v18, %v239_v19 }
 0x37d   :  { %v246_v22 = vpack.c.bf16 %v245_v21, %v244_v20 }
 0x37f   :  { %933 = vmatmul.mubr.msk.bf16.vlgmr.msra.gmra.mrb[4].mxu0 %vm166_vm1, %v246_v22 }
 0x380   :  { %992 = vmatprep.mubr.msk.f32.mxu0 %vm1061_vm2, %v1060_v4 }
 0x452   :  { %v305_v24 = vpop.f32.mrb[4].mxu0 }
 0x453   :  { %v934_v25 = vpop.f32.mrb[5].mxu0  ;;  %v306_v27 = vadd.f32 %v872_v23, %v305_v24 }
 0x454   :  { %v308_v26 = vpop.f32.mrb[6].mxu0 }
 0x455   :  { %v309_v28 = vadd.f32 %v872_v23, %v308_v26  ;;  %v935_v29 = vpop.f32.mrb[7].mxu0 }
 0x456   :  { %v1024_v29 = vld [vmem:[%s1311_s1 + $0x88] sm:$0xff]  }
 0x457   :  { %v312_v30 = vpack.c.bf16 %v309_v28, %v306_v27  ;;  %v1023_v28 = vld [vmem:[%s1311_s1 + $0x80] sm:$0xff]  }
 0x459   :  { %314 = vrot.lane.b32.xlu0 %v312_v30, %s1062_s7 }
 0x4cb   :  { %v315_v31 = vpop.permute.xlu0 %314 }
 0x4cc   :  { %v320_v32 = vsel %vm166_vm1, %v315_v31, 0 }
 0x4cd   :  { %937 = vmatpush3.bf16.xpose.msra.mxu1 %v320_v32 }
 0x4ce   :  { %942 = vmatprep.subr.bf16.mxu1 %v1060_v4 }
 0x4d4   :  { %939 = vmatmul.mubr.msk.bf16.vlgmr.msra.gmra.mrb[0].mxu1 %vm166_vm1, %v312_v30 }
 0x4d5   :  { %944 = vmatprep.mubr.msk.bf16.mxu1 %vm1061_vm2, %v1060_v4 }
 0x5a7   :  { %v356_v33 = vpop.f32.mrb[0].mxu1 }
 0x5a8   :  { %v363_v35 = vmul.f32 0.17677669, %v356_v33  ;;  %v940_v36 = vpop.f32.mrb[1].mxu1 }
 0x5a9   :  { %v359_v37 = vpop.f32.mrb[2].mxu1 }
 0x5aa   :  { %v364_v39 = vmul.f32 0.17677669, %v359_v37  ;;  %v941_v40 = vpop.f32.mrb[3].mxu1  ;;  %v367_v41 = vadd.f32 %v365_v34, %v363_v35 }
 0x5ac   :  { %v370_v42 = vsel %vm369_vm3, %v367_v41, -inf  ;;  %v368_v43 = vadd.f32 %v366_v38, %v364_v39  ;;  %v882_v38 = vld [vmem:[%s1313_s2 + $0x24] ss:$0 sm:$0xff] }
 0x5ad   :  { %371 = vmax.xlane.f32.xlu1 %v370_v42  ;;  %v883_v42 = vld [vmem:[%s1313_s2 + $0x25] ss:$0 sm:$0xff] }
 0x5ae   :  { %v373_v44 = vsel %vm369_vm3, %v368_v43, -inf }
 0x5b1   :  { %374 = vmax.xlane.f32.xlu1 %v373_v44 }
 0x63a   :  { %v372_v45 = vpop.xlane.xlu1 %371 }
 0x63b   :  { %v376_v46 = vsub.f32 %v367_v41, %v372_v45 }
 0x63d   :  { %v378_v47 = vmul.f32 1.442695, %v376_v46 }
 0x63e   :  { %v375_v48 = vpop.xlane.xlu1 %374 }
 0x63f   :  { %1041 = vpow2.f32 %v378_v47  ;;  %v377_v49 = vsub.f32 %v368_v43, %v375_v48  ;;  %v1025_v47 = vld [vmem:[%s1311_s1 + $0x90] sm:$0xff]   ;;  %v1026_v48 = vld [vmem:[%s1311_s1 + $0x98] sm:$0xff]  }
 0x641   :  { %v380_v50 = vmul.f32 1.442695, %v377_v49  ;;  %v1027_v49 = vld [vmem:[%s1311_s1 + $0xa0] sm:$0xff]  }
 0x643   :  { %1043 = vpow2.f32 %v380_v50  ;;  %v1028_v50 = vld [vmem:[%s1311_s1 + $0xa8] sm:$0xff]  }
 0x649   :  { %v1042_v52 = vpop.eup %1041 }
 0x64a   :  { %v382_v53 = vsel %vm369_vm3, %v1042_v52, 0.0 }
 0x64b   :  { %383 = vadd.xlane.f32.xlu1 %v382_v53  ;;  %v1030_v53 = vld [vmem:[%s1311_s1 + $0xb8] sm:$0xff]  }
 0x64d   :  { %v1044_v54 = vpop.eup %1043 }
 0x64e   :  { %v385_v56 = vsel %vm369_vm3, %v1044_v54, 0.0 }
 0x64f   :  { %386 = vadd.xlane.f32.xlu1 %v385_v56  ;;  %v1032_v56 = vld [vmem:[%s1311_s1 + $0xc8] sm:$0xff]  }
 0x660   :  { %393 = vrot.lane.b32.xlu1 %v312_v30, %s1063_s12 }
 0x6d8   :  { %v384_v57 = vpop.xlane.xlu1 %383 }
 0x6d9   :  { %1045 = vrcp.f32 %v384_v57  ;;  %v884_v57 = vld [vmem:[%s1313_s2 + $0x2a] ss:$0 sm:$0xff] }
 0x6dc   :  { %v387_v58 = vpop.xlane.xlu1 %386 }
 0x6dd   :  { %1047 = vrcp.f32 %v387_v58 }
 0x6e0   :  { %v394_v59 = vpop.permute.xlu1 %393 }
 0x6e1   :  { %943 = vmatpush3.bf16.msra.mxu1 %v394_v59 }
 0x6e2   :  { %948 = vmatprep.subr.bf16.mxu1 %v1060_v4 }
 0x6e3   :  { %v1046_v60 = vpop.eup %1045 }
 0x6e4   :  { %v390_v62 = vmul.f32 %v1046_v60, %v1042_v52  ;;  %v1029_v52 = vld [vmem:[%s1311_s1 + $0xb0] sm:$0xff]  }
 0x6e7   :  { %v1048_v61 = vpop.eup %1047 }
 0x6e8   :  { %v391_v63 = vmul.f32 %v1048_v61, %v1044_v54  ;;  %v1031_v54 = vld [vmem:[%s1311_s1 + $0xc0] sm:$0xff]  }
 0x6ea   :  { %v392_v1 = vpack.c.bf16 %v391_v63, %v390_v62 }
 0x6ec   :  { %945 = vmatmul.mubr.msk.bf16.vlgmr.msra.gmra.mrb[4].mxu1 %vm369_vm3, %v392_v1 }
 0x6ed   :  { %949 = vmatpush3.bf16.msra.mxu1 %v1021_v0  ;;  %952 = vmatprep.mubr.msk.bf16.mxu1 %vm1061_vm2, %v1060_v4 }
 0x6ee   :  { %950 = vmatprep.subr.bf16.mxu1 %v1060_v4 }
 0x6f1   :  { %951 = vmatpush3.bf16.msra.mxu1 %v1022_v2 }
 0x6f2   :  { %956 = vmatprep.subr.bf16.mxu1 %v1060_v4 }
 0x7bf   :  { %v433_v3 = vpop.f32.mrb[4].mxu1 }
 0x7c0   :  { %v946_v5 = vpop.f32.mrb[5].mxu1 }
 0x7c1   :  { %v436_v6 = vpop.f32.mrb[6].mxu1 }
 0x7c2   :  { %v440_v7 = vpack.c.bf16 %v436_v6, %v433_v3  ;;  %v947_v8 = vpop.f32.mrb[7].mxu1 }
 0x7c4   :  { %953 = vmatmul.mubr.msk.bf16.vlgmr.msra.gmra.mrb[8].mxu1 %vm166_vm1, %v440_v7 }
 0x7c5   :  { %960 = vmatprep.mubr.msk.bf16.mxu1 %vm1061_vm2, %v1060_v4  ;;  %957 = vmatpush3.bf16.msra.mxu1 %v1023_v28 }
 0x7c6   :  { %958 = vmatprep.subr.bf16.mxu1 %v1060_v4 }
 0x7c9   :  { %959 = vmatpush3.bf16.msra.mxu1 %v1024_v29 }
 0x7ca   :  { %964 = vmatprep.subr.bf16.mxu1 %v1060_v4 }
 0x897   :  { %v499_v10 = vpop.f32.mrb[8].mxu1 }
 0x898   :  { %v500_v11 = vadd.f32 %v878_v9, %v499_v10  ;;  %v954_v12 = vpop.f32.mrb[9].mxu1 }
 0x899   :  { %v502_v13 = vpop.f32.mrb[10].mxu1 }
 0x89a   :  { %v503_v14 = vadd.f32 %v878_v9, %v502_v13  ;;  %v955_v15 = vpop.f32.mrb[11].mxu1  ;;  %v506_v16 = vadd.f32 %v500_v11, %v1149_v51 }
 0x89c   :  { %v1221_v17 = vadd.f32 %v503_v14, %v1153_v55  ;;  %v510_v18 = vsel %vm166_vm1, %v506_v16, 0.0 }
 0x89d   :  { %511 = vadd.xlane.f32.xlu0 %v510_v18 }
 0x89e   :  { %v513_v19 = vsel %vm166_vm1, %v1221_v17, 0.0 }
 0x89f   :  { %514 = vadd.xlane.f32.xlu1 %v513_v19 }
 0x92a   :  { %v512_v20 = vpop.xlane.xlu0 %511 }
 0x92b   :  { %v516_v21 = vmul.f32 0.03125, %v512_v20 }
 0x92c   :  { %v515_v22 = vpop.xlane.xlu1 %514 }
 0x92d   :  { %v518_v23 = vsub.f32 %v506_v16, %v516_v21  ;;  %v517_v24 = vmul.f32 0.03125, %v515_v22  ;;  %v888_v21 = vld [vmem:[%s1313_s2 + $0x2b] ss:$0 sm:$0xff] }
 0x92f   :  { %v519_v25 = vsub.f32 %v1221_v17, %v517_v24  ;;  %v520_v26 = vmul.f32 %v518_v23, %v518_v23 }
 0x931   :  { %v522_v51 = vsel %vm166_vm1, %v520_v26, 0.0  ;;  %v521_v27 = vmul.f32 %v519_v25, %v519_v25 }
 0x932   :  { %523 = vadd.xlane.f32.xlu0 %v522_v51 }
 0x933   :  { %v525_v55 = vsel %vm166_vm1, %v521_v27, 0.0 }
 0x936   :  { %526 = vadd.xlane.f32.xlu0 %v525_v55 }
 0x9bf   :  { %v524_v30 = vpop.xlane.xlu0 %523 }
 0x9c0   :  { %v528_v31 = vmul.f32 0.03125, %v524_v30 }
 0x9c2   :  { %v530_v32 = vadd.f32 1e-05, %v528_v31  ;;  %v768_v31 = vld [vmem:[%s1313_s2 + $0x30] sm:$0xff] }
 0x9c3   :  { %v527_v33 = vpop.xlane.xlu0 %526 }
 0x9c4   :  { %1049 = vrsqrt.f32 %v530_v32  ;;  %v529_v34 = vmul.f32 0.03125, %v527_v33  ;;  %v769_v32 = vld [vmem:[%s1313_s2 + $0x38] sm:$0xff] }
 0x9c5   :  { %v996_v33 = vpack.c.bf16 %v769_v32, %v768_v31 }
 0x9c6   :  { %v531_v35 = vadd.f32 1e-05, %v529_v34  ;;  %v770_v34 = vld [vmem:[%s1313_s2 + $0x40] sm:$0xff] }
 0x9c8   :  { %1051 = vrsqrt.f32 %v531_v35  ;;  %v771_v35 = vld [vmem:[%s1313_s2 + $0x48] sm:$0xff] }
 0x9ce   :  { %v1050_v36 = vpop.eup %1049 }
 0x9cf   :  { %v534_v37 = vmul.f32 %v1050_v36, %v518_v23  ;;  %v999_v36 = vpack.c.bf16 %v771_v35, %v770_v34 }
 0x9d1   :  { %v540_v40 = vmul.f32 %v882_v38, %v534_v37 }
 0x9d2   :  { %v1052_v39 = vpop.eup %1051 }
 0x9d3   :  { %v535_v41 = vmul.f32 %v1052_v39, %v519_v25  ;;  %v546_v44 = vadd.f32 %v883_v42, %v540_v40 }
 0x9d5   :  { %v541_v43 = vmul.f32 %v882_v38, %v535_v41  ;;  %v897_v41 = vld [vmem:[%s1313_s2 + $0x26] ss:$0 sm:$0xff] }
 0x9d7   :  { %v547_v45 = vadd.f32 %v883_v42, %v541_v43  ;;  %v898_v43 = vld [vmem:[%s1313_s2 + $0x27] ss:$0 sm:$0xff] }
 0x9d9   :  { %v548_v46 = vpack.c.bf16 %v547_v45, %v546_v44 }
 0x9db   :  { %961 = vmatmul.mubr.msk.bf16.vlgmr.msra.gmra.mrb[12].mxu1 %vm166_vm1, %v548_v46  ;;  %v899_v46 = vld [vmem:[%s1313_s2 + $0x2c] ss:$0 sm:$0xff] }
 0x9dc   :  { %980 = vmatprep.mubr.msk.bf16.mxu1 %vm1061_vm2, %v1060_v4  ;;  %965 = vmatpush3.bf16.msra.mxu1 %v1025_v47 }
 0x9dd   :  { %966 = vmatprep.subr.bf16.mxu1 %v1060_v4 }
 0x9e0   :  { %967 = vmatpush3.bf16.msra.mxu1 %v1026_v48 }
 0x9e1   :  { %968 = vmatprep.subr.bf16.mxu1 %v1060_v4 }
 0x9e4   :  { %969 = vmatpush3.bf16.msra.mxu1 %v1027_v49 }
 0x9e5   :  { %970 = vmatprep.subr.bf16.mxu1 %v1060_v4 }
 0x9e8   :  { %971 = vmatpush3.bf16.msra.mxu1 %v1028_v50 }
 0x9e9   :  { %972 = vmatprep.subr.bf16.mxu1 %v1060_v4 }
 0x9ec   :  { %973 = vmatpush3.bf16.msra.mxu1 %v1029_v52 }
 0x9ed   :  { %974 = vmatprep.subr.bf16.mxu1 %v1060_v4 }
 0x9f0   :  { %975 = vmatpush3.bf16.msra.mxu1 %v1030_v53 }
 0x9f1   :  { %976 = vmatprep.subr.bf16.mxu1 %v1060_v4 }
 0x9f4   :  { %977 = vmatpush3.bf16.msra.mxu1 %v1031_v54 }
 0x9f5   :  { %978 = vmatprep.subr.bf16.mxu1 %v1060_v4 }
 0x9f8   :  { %979 = vmatpush3.bf16.msra.mxu1 %v1032_v56 }
 0xaae   :  { %v607_v58 = vpop.f32.mrb[12].mxu1 }
 0xaaf   :  { %v608_v59 = vadd.f32 %v884_v57, %v607_v58  ;;  %v962_v60 = vpop.f32.mrb[13].mxu1 }
 0xab0   :  { %v610_v61 = vpop.f32.mrb[14].mxu1 }
 0xab1   :  { %v616_v62 = vmul.f32 0.044715, %v608_v59  ;;  %v611_v63 = vadd.f32 %v884_v57, %v610_v61  ;;  %v963_v0 = vpop.f32.mrb[15].mxu1  ;;  %v614_v13 = vmul.f32 0.5, %v608_v59 }
 0xab3   :  { %v618_v1 = vmul.f32 %v616_v62, %v608_v59  ;;  %v617_v2 = vmul.f32 0.044715, %v611_v63  ;;  %v615_v14 = vmul.f32 0.5, %v611_v63 }
 0xab5   :  { %v620_v3 = vmul.f32 %v618_v1, %v608_v59  ;;  %v619_v5 = vmul.f32 %v617_v2, %v611_v63 }
 0xab7   :  { %v622_v6 = vadd.f32 %v620_v3, %v608_v59  ;;  %v621_v7 = vmul.f32 %v619_v5, %v611_v63 }
 0xab9   :  { %v624_v8 = vmul.f32 0.7978846, %v622_v6  ;;  %v623_v4 = vadd.f32 %v621_v7, %v611_v63 }
 0xabb   :  { %1053 = vtanh.f32 %v624_v8  ;;  %v625_v9 = vmul.f32 0.7978846, %v623_v4 }
 0xabd   :  { %1055 = vtanh.f32 %v625_v9 }
 0xac5   :  { %v1054_v10 = vpop.eup %1053 }
 0xac6   :  { %v628_v11 = vadd.f32 1.0, %v1054_v10 }
 0xac7   :  { %v1056_v12 = vpop.eup %1055 }
 0xac8   :  { %v629_v15 = vadd.f32 1.0, %v1056_v12  ;;  %v630_v16 = vmul.f32 %v628_v11, %v614_v13 }
 0xaca   :  { %v631_v18 = vmul.f32 %v629_v15, %v615_v14 }
 0xacc   :  { %v632_v19 = vpack.c.bf16 %v631_v18, %v630_v16 }
 0xace   :  { %981 = vmatmul.mubr.bf16.vlgmr.msra.gmra.mrb[16].mxu1 %v632_v19 }
 0xba1   :  { %v736_v20 = vpop.f32.mrb[16].mxu1 }
 0xba2   :  { %v982_v22 = vpop.f32.mrb[17].mxu1 }
 0xba3   :  { %v738_v23 = vpop.f32.mrb[18].mxu1 }
 0xba4   :  { %v739_v24 = vadd.f32 %v888_v21, %v738_v23  ;;  %v983_v25 = vpop.f32.mrb[19].mxu1 }
 0xba6   :  { %v742_v26 = vadd.f32 %v739_v24, %v1221_v17  ;;  %v1064_v17 = vmov 0.0|0.0  }
 0xba7   :  { %995 = vmatprep.subr.bf16.mxu0 %v1064_v17 }
 0xba8   :  { %v745_v51 = vsel %vm166_vm1, %v742_v26, 0.0  ;;  %997 = vmatpush3.bf16.msra.mxu0 %v996_v33 }
 0xba9   :  { %746 = vadd.xlane.f32.xlu0 %v745_v51  ;;  %998 = vmatprep.subr.bf16.mxu0 %v1064_v17 }
 0xbac   :  { %1000 = vmatpush3.bf16.msra.mxu0 %v999_v36 }
 0xc36   :  { %v747_v27 = vpop.xlane.xlu0 %746 }
 0xc37   :  { %v748_v55 = vmul.f32 0.03125, %v747_v27 }
 0xc39   :  { %v749_v28 = vsub.f32 %v742_v26, %v748_v55 }
 0xc3b   :  { %v750_v29 = vmul.f32 %v749_v28, %v749_v28 }
 0xc3d   :  { %v751_v30 = vsel %vm166_vm1, %v750_v29, 0.0 }
 0xc3e   :  { %752 = vadd.xlane.f32.xlu0 %v751_v30 }
 0xccb   :  { %v753_v37 = vpop.xlane.xlu0 %752 }
 0xccc   :  { %v754_v38 = vmul.f32 0.03125, %v753_v37 }
 0xcce   :  { %v755_v39 = vadd.f32 1e-05, %v754_v38 }
 0xcd0   :  { %1057 = vrsqrt.f32 %v755_v39 }
 0xcda   :  { %v1058_v40 = vpop.eup %1057 }
 0xcdb   :  { %v757_v42 = vmul.f32 %v1058_v40, %v749_v28 }
 0xcdd   :  { %v762_v44 = vmul.f32 %v897_v41, %v757_v42 }
 0xcdf   :  { %v767_v45 = vadd.f32 %v898_v43, %v762_v44 }
 0xce1   :  { %993 = vmatmul.mubr.msk.f32.vlgmr.msra.gmra.mrb[8].mxu0 %vm166_vm1, %v767_v45 }
 0xdb4   :  { %v846_v47 = vpop.f32.mrb[8].mxu0 }
 0xdb5   :  { %v847_v48 = vadd.f32 %v899_v46, %v846_v47  ;;  %v994_v49 = vpop.f32.mrb[9].mxu0 }
 0xdb7   :  { %850 = vst [vmem:[%s1314_s3] sm:$0xff] %v847_v48 }

</bundles_post_ra>
